<compile_context>
chip_gen: v7x
topology: tpu7x:2x2x1
jax: 0.10.0
libtpu: 0.0.40
codegen_flags: <defaults>
</compile_context>

<pallas_src>
import jax
import jax.numpy as jnp
from jax.experimental import pallas as pl
from jax.experimental.pallas import tpu as pltpu


# ----------------------------- helpers ------------------------------------- #

def _round_up(x, m):
    return (x + m - 1) // m * m


def _tiling(n, width):
    """Row tile + padded N for the CE-family kernels.

    Keeps a single (tile, width) f32 block under ~8 MiB so the
    double-buffered pipeline stays well inside the scoped VMEM limit even
    for very large class counts.
    """
    budget_rows = (8 * 1024 * 1024) // (4 * max(width, 1))
    max_rows = max(8, min(512, (budget_rows // 8) * 8))
    tile = _round_up(n, 8) if n <= max_rows else max_rows
    return tile, _round_up(n, tile)


def _pad_rows(a, n_pad):
    n = a.shape[0]
    if n == n_pad:
        return a
    return jnp.pad(a, ((0, n_pad - n),) + ((0, 0),) * (a.ndim - 1))


# ----------------------------- kernels ------------------------------------- #

def _make_scalar_ce_kernel(mode, power, has_weight, has_kl, kl_lambda, n_valid):
    """Focal / (weighted) CE over one row block -> one (1,1) partial sum."""

    def kernel(*refs):
        it = iter(refs)
        logits_ref = next(it)                         # (tile_n, C)
        tgt_ref = next(it)                            # (tile_n, 1) int32
        w_ref = next(it) if has_weight else None      # (tile_n, 1)
        mu_ref = next(it) if has_kl else None         # (tile_n, Z)
        lv_ref = next(it) if has_kl else None         # (tile_n, Z)
        out_ref = next(it)                            # (1, 1) per-block partial

        step = pl.program_id(0)

        logits = logits_ref[...]
        tile_n, num_cls = logits.shape
        tgt = tgt_ref[...]

        # Per-row cross entropy without a materialized one-hot.
        m = jnp.max(logits, axis=-1, keepdims=True)
        lse = m + jnp.log(jnp.sum(jnp.exp(logits - m), axis=-1, keepdims=True))
        cls_ids = jax.lax.broadcasted_iota(jnp.int32, (tile_n, num_cls), 1)
        picked = jnp.sum(jnp.where(cls_ids == tgt, logits, 0.0),
                         axis=-1, keepdims=True)
        logp = lse - picked                           # (tile_n, 1)

        if mode == 'focal':
            prob = jnp.exp(-logp)
            contrib = (1.0 - prob) ** power * logp
        else:
            contrib = logp
        if has_weight:
            contrib = contrib * w_ref[...]

        # Mask padded rows (global row index >= n_valid contributes 0).
        row_ids = (jax.lax.broadcasted_iota(jnp.int32, (tile_n, 1), 0)
                   + step * tile_n)
        contrib = jnp.where(row_ids < n_valid, contrib, 0.0)
        partial = jnp.sum(contrib)

        if has_kl:
            mu = mu_ref[...]
            lv = lv_ref[...]
            # Zero-padded rows give exactly 0 here.
            kl = -(1.0 + lv - mu * mu - jnp.exp(lv)) * 0.5
            partial = partial + kl_lambda * jnp.sum(kl)

        out_ref[...] = partial.reshape(1, 1)

    return kernel


def _make_rowvec_ce_kernel(has_kl):
    """Per-sample CE on transposed logits -> lane-dense (1, tile_n) output.

    Optionally emits the per-block KL sum as a second (1,1) output.
    """

    def kernel(*refs):
        it = iter(refs)
        logits_t_ref = next(it)                       # (C, tile_n)
        tgt_ref = next(it)                            # (1, tile_n) int32
        mu_ref = next(it) if has_kl else None         # (tile_n, Z)
        lv_ref = next(it) if has_kl else None         # (tile_n, Z)
        logp_ref = next(it)                           # (1, tile_n) out
        kl_ref = next(it) if has_kl else None         # (1, 1) out (per block)

        lt = logits_t_ref[...]
        num_cls, tile_n = lt.shape
        tgt = tgt_ref[...]

        # Sublane reductions over C keep the result lane-dense: no relayout.
        m = jnp.max(lt, axis=0, keepdims=True)                      # (1, tile_n)
        lse = m + jnp.log(jnp.sum(jnp.exp(lt - m), axis=0, keepdims=True))
        cls_ids = jax.lax.broadcasted_iota(jnp.int32, (num_cls, tile_n), 0)
        picked = jnp.sum(jnp.where(cls_ids == tgt, lt, 0.0),
                         axis=0, keepdims=True)
        logp_ref[...] = lse - picked

        if has_kl:
            mu = mu_ref[...]
            lv = lv_ref[...]
            kl = -(1.0 + lv - mu * mu - jnp.exp(lv)) * 0.5
            kl_ref[...] = jnp.sum(kl).reshape(1, 1)

    return kernel


def _make_triplet_kernel(margin, has_kl, kl_lambda, n_valid):
    """Flash-style hard-mining triplet: row-block (parallel) x column-block."""

    def kernel(*refs):
        it = iter(refs)
        x_ref = next(it)                              # (tm, D)  anchor rows
        xt_ref = next(it)                             # (D, tn)  candidate columns
        tcol_ref = next(it)                           # (tm, 1)  int32 labels
        trow_ref = next(it)                           # (1, tn)  int32 labels
        mu_ref = next(it) if has_kl else None
        lv_ref = next(it) if has_kl else None
        out_ref = next(it)                            # (1, 1) per-row-block partial
        ap_ref = next(it)                             # (tm, 1) running hardest positive
        an_ref = next(it)                             # (tm, 1) running hardest negative
        sq_ref = next(it)                             # (tm, 1) anchor squared norms
        part_ref = next(it)                           # (1, 1) per-row-block accumulator

        r = pl.program_id(0)
        c = pl.program_id(1)
        last_c = pl.num_programs(1) - 1

        @pl.when(c == 0)
        def _init_row_block():
            ap_ref[...] = jnp.full_like(ap_ref, -jnp.inf)
            an_ref[...] = jnp.full_like(an_ref, jnp.inf)
            xr = x_ref[...]
            sq_ref[...] = jnp.sum(xr * xr, axis=1, keepdims=True)
            if has_kl:
                mu = mu_ref[...]
                lv = lv_ref[...]
                kl = -(1.0 + lv - mu * mu - jnp.exp(lv)) * 0.5
                part_ref[...] = (kl_lambda * jnp.sum(kl)).reshape(1, 1)
            else:
                part_ref[...] = jnp.zeros_like(part_ref)

        x = x_ref[...]
        xt = xt_ref[...]
        tm = x.shape[0]
        tn = xt.shape[1]

        # Gram on the MXU (f32 to match torch numerics); norms come from
        # VPU/XLU reductions -- no K=1 broadcast matmuls.
        gram = jax.lax.dot_general(x, xt, (((1,), (0,)), ((), ())),
                                   preferred_element_type=jnp.float32)
        sq_col = jnp.sum(xt * xt, axis=0, keepdims=True)     # (1, tn)
        d2 = sq_ref[...] + sq_col - 2.0 * gram
        dist = jnp.sqrt(jnp.maximum(d2, 1e-12))               # clamp(min=1e-12).sqrt()

        same = tcol_ref[...] == trow_ref[...]                  # (tm, tn)
        col_ids = jax.lax.broadcasted_iota(jnp.int32, (1, tn), 1) + c * tn
        col_valid = col_ids < n_valid

        pos = jnp.logical_and(same, col_valid)
        neg = jnp.logical_and(jnp.logical_not(same), col_valid)

        ap_ref[...] = jnp.maximum(
            ap_ref[...],
            jnp.max(jnp.where(pos, dist, -jnp.inf), axis=1, keepdims=True))
        an_ref[...] = jnp.minimum(
            an_ref[...],
            jnp.min(jnp.where(neg, dist, jnp.inf), axis=1, keepdims=True))

        @pl.when(c == last_c)
        def _row_block_done():
            row_ids = jax.lax.broadcasted_iota(jnp.int32, (tm, 1), 0) + r * tm
            # margin_ranking_loss(dist_an, dist_ap, y=1) = relu(ap - an + margin)
            hinge = jnp.maximum(ap_ref[...] - an_ref[...] + margin, 0.0)
            hinge = jnp.where(row_ids < n_valid, hinge, 0.0)
            out_ref[...] = part_ref[...] + jnp.sum(hinge).reshape(1, 1)

    return kernel


# ----------------------------- wrappers ------------------------------------ #

def _scalar_ce_loss(args, predy, target, weight, mu, logvar, mode):
    n, c = predy.shape
    tile_n, n_pad = _tiling(n, c)
    grid_n = n_pad // tile_n
    has_weight = (mode == 'ce') and (weight is not None)
    has_kl = (mu is not None) and (logvar is not None)

    logits = _pad_rows(predy.astype(jnp.float32), n_pad)
    tgt = _pad_rows(target.astype(jnp.int32).reshape(n, 1), n_pad)

    inputs = [logits, tgt]
    in_specs = [pl.BlockSpec((tile_n, c), lambda i: (i, 0)),
                pl.BlockSpec((tile_n, 1), lambda i: (i, 0))]
    if has_weight:
        inputs.append(_pad_rows(weight.astype(jnp.float32).reshape(n, 1), n_pad))
        in_specs.append(pl.BlockSpec((tile_n, 1), lambda i: (i, 0)))
    if has_kl:
        z = mu.shape[1]
        inputs += [_pad_rows(mu.astype(jnp.float32), n_pad),
                   _pad_rows(logvar.astype(jnp.float32), n_pad)]
        in_specs += [pl.BlockSpec((tile_n, z), lambda i: (i, 0)),
                     pl.BlockSpec((tile_n, z), lambda i: (i, 0))]

    kernel = _make_scalar_ce_kernel(
        mode=mode,
        power=getattr(args, 'loss_power', 2),
        has_weight=has_weight,
        has_kl=has_kl,
        kl_lambda=float(getattr(args, 'kl_lambda', 0.0)),
        n_valid=n)

    partials = pl.pallas_call(
        kernel,
        grid=(grid_n,),
        in_specs=in_specs,
        out_specs=pl.BlockSpec((1, 1), lambda i: (i, 0)),
        out_shape=jax.ShapeDtypeStruct((grid_n, 1), jnp.float32),
        # One independent partial per block -> megacore-splittable axis.
        compiler_params=pltpu.CompilerParams(
            dimension_semantics=("parallel",)),
    )(*inputs)
    return jnp.sum(partials) * (1.0 / n)


def _hardmining_loss(args, predy, target, mu, logvar):
    n, c = predy.shape
    tile_n, n_pad = _tiling(n, c)
    grid_n = n_pad // tile_n
    has_kl = (mu is not None) and (logvar is not None)

    # Wrapper-side transpose is layout plumbing: it lets the kernel emit a
    # lane-dense (1, N) per-sample CE row instead of an (N, 1) masked column.
    logits_t = _pad_rows(predy.astype(jnp.float32), n_pad).T            # (C, n_pad)
    tgt_row = _pad_rows(target.astype(jnp.int32).reshape(n, 1),
                        n_pad).reshape(1, n_pad)

    inputs = [logits_t, tgt_row]
    in_specs = [pl.BlockSpec((c, tile_n), lambda i: (0, i)),
                pl.BlockSpec((1, tile_n), lambda i: (0, i))]
    out_shape = jax.ShapeDtypeStruct((1, n_pad), jnp.float32)
    out_spec = pl.BlockSpec((1, tile_n), lambda i: (0, i))
    if has_kl:
        z = mu.shape[1]
        inputs += [_pad_rows(mu.astype(jnp.float32), n_pad),
                   _pad_rows(logvar.astype(jnp.float32), n_pad)]
        in_specs += [pl.BlockSpec((tile_n, z), lambda i: (i, 0)),
                     pl.BlockSpec((tile_n, z), lambda i: (i, 0))]
        out_shape = (out_shape, jax.ShapeDtypeStruct((1, grid_n), jnp.float32))
        out_spec = [out_spec, pl.BlockSpec((1, 1), lambda i: (0, i))]

    res = pl.pallas_call(
        _make_rowvec_ce_kernel(has_kl=has_kl),
        grid=(grid_n,),
        in_specs=in_specs,
        out_specs=out_spec,
        out_shape=out_shape,
        compiler_params=pltpu.CompilerParams(
            dimension_semantics=("parallel",)),
    )(*inputs)

    if has_kl:
        logp_row, kl_part = res
    else:
        logp_row, kl_part = res, None

    logp = logp_row[0, :n]
    num_hard = int(args.hard_ratio * n)
    # TODO(synk): argsort/top-k hard-example selection has no Pallas TPU primitive; done in plain JAX.
    hard_vals = jax.lax.top_k(logp, num_hard)[0]
    # torch: sum(cross_entropy(predy[hard], target[hard])) == mean over the hard set.
    loss = jnp.mean(hard_vals)
    if has_kl:
        loss = loss + args.kl_lambda * (jnp.sum(kl_part) / n)
    return loss


def _triplet_loss(args, predy, target, mu, logvar):
    n, d = predy.shape
    if n <= 512:
        tm = tn = n_pad = _round_up(n, 8)
    else:
        tm, tn = 256, 512
        n_pad = _round_up(n, 512)
    grid = (n_pad // tm, n_pad // tn)
    has_kl = (mu is not None) and (logvar is not None)

    x = _pad_rows(predy.astype(jnp.float32), n_pad)      # (n_pad, d) anchor rows
    xt = x.T                                             # (d, n_pad) candidate cols
    tcol = _pad_rows(target.astype(jnp.int32).reshape(n, 1), n_pad)
    trow = tcol.reshape(1, n_pad)

    inputs = [x, xt, tcol, trow]
    in_specs = [pl.BlockSpec((tm, d), lambda r, c: (r, 0)),
                pl.BlockSpec((d, tn), lambda r, c: (0, c)),
                pl.BlockSpec((tm, 1), lambda r, c: (r, 0)),
                pl.BlockSpec((1, tn), lambda r, c: (0, c))]
    if has_kl:
        z = mu.shape[1]
        inputs += [_pad_rows(mu.astype(jnp.float32), n_pad),
                   _pad_rows(logvar.astype(jnp.float32), n_pad)]
        in_specs += [pl.BlockSpec((tm, z), lambda r, c: (r, 0)),
                     pl.BlockSpec((tm, z), lambda r, c: (r, 0))]

    kernel = _make_triplet_kernel(
        margin=float(args.triplet_margin),
        has_kl=has_kl,
        kl_lambda=float(getattr(args, 'kl_lambda', 0.0)),
        n_valid=n)

    partials = pl.pallas_call(
        kernel,
        grid=grid,
        in_specs=in_specs,
        out_specs=pl.BlockSpec((1, 1), lambda r, c: (r, 0)),
        out_shape=jax.ShapeDtypeStruct((grid[0], 1), jnp.float32),
        scratch_shapes=[pltpu.VMEM((tm, 1), jnp.float32),   # running dist_ap
                        pltpu.VMEM((tm, 1), jnp.float32),   # running dist_an
                        pltpu.VMEM((tm, 1), jnp.float32),   # anchor squared norms
                        pltpu.VMEM((1, 1), jnp.float32)],   # per-row-block partial
        # Row blocks are independent (parallel); the column axis is the
        # hard-mining reduction carried through scratch (arbitrary).
        compiler_params=pltpu.CompilerParams(
            dimension_semantics=("parallel", "arbitrary")),
    )(*inputs)
    return jnp.sum(partials) * (1.0 / n)


class Args:
    def __init__(self, **kw):
        self.__dict__.update(kw)


def cls_loss(args, predy, target, weight=None, mu=None, logvar=None):
    """Forward pass of ClsLoss; KL term (if mu/logvar given) is fused in-kernel."""
    mode = args.loss_mode
    if mode == 'focal_loss':
        return _scalar_ce_loss(args, predy, target, None, mu, logvar, mode='focal')
    elif mode == 'hardmining':
        return _hardmining_loss(args, predy, target, mu, logvar)
    elif mode == 'triplet':
        return _triplet_loss(args, predy, target, mu, logvar)
    else:  # plain (optionally weighted) cross entropy
        return _scalar_ce_loss(args, predy, target, weight, mu, logvar, mode='ce')


# -------------------------------- main -------------------------------------- #

if __name__ == "__main__":
    key = jax.random.PRNGKey(0)
    k1, k2, k3, k4, k5 = jax.random.split(key, 5)

    N, C, Z = 8, 32, 16
    predy = jax.random.normal(k1, (N, C), jnp.float32)
    target = jax.random.randint(k2, (N,), 0, C)
    weight = jax.random.uniform(k3, (N,), jnp.float32, minval=0.5, maxval=1.5)
    mu = jax.random.normal(k4, (N, Z), jnp.float32)
    logvar = 0.1 * jax.random.normal(k5, (N, Z), jnp.float32)

    args = Args(loss_mode='focal_loss', loss_power=2, hard_ratio=0.5,
                triplet_margin=0.3, kl_lambda=0.01)

    # focal loss + fused KL term
    loss_focal = cls_loss(args, predy, target, mu=mu, logvar=logvar)
    jax.block_until_ready(loss_focal)

    # default (weighted) cross entropy
    args.loss_mode = 'plain'
    loss_ce = cls_loss(args, predy, target, weight=weight)
    jax.block_until_ready(loss_ce)

    # hard mining (with and without the fused KL term)
    args.loss_mode = 'hardmining'
    loss_hard = cls_loss(args, predy, target)
    jax.block_until_ready(loss_hard)
    loss_hard_kl = cls_loss(args, predy, target, mu=mu, logvar=logvar)
    jax.block_until_ready(loss_hard_kl)

    # triplet (embeddings + identity labels with both positives and negatives)
    args.loss_mode = 'triplet'
    target_trip = jnp.array([0, 0, 1, 1, 2, 2, 0, 1], dtype=jnp.int32)
    loss_trip = cls_loss(args, predy, target_trip)
    jax.block_until_ready(loss_trip)
    loss_trip_kl = cls_loss(args, predy, target_trip, mu=mu, logvar=logvar)
    jax.block_until_ready(loss_trip_kl)

    print("KERNEL_OK")
</pallas_src>

<mosaic_0001>
module attributes {stable_mosaic.version = 11 : i64} {
  func.func @kernel(%arg0: i32, %arg1: memref<8x32xf32, #tpu.memory_space<vmem>>, %arg2: memref<8x1xi32, #tpu.memory_space<vmem>>, %arg3: memref<8x16xf32, #tpu.memory_space<vmem>>, %arg4: memref<8x16xf32, #tpu.memory_space<vmem>>, %arg5: memref<1x1xf32, #tpu.memory_space<vmem>>) attributes {dimension_semantics = [#tpu.dimension_semantics<parallel>], iteration_bounds = array<i64: 1>, scalar_prefetch = 0 : i64, scratch_operands = 0 : i64, tpu.core_type = #tpu.core_type<tc>, window_params = [{transform_indices = @transform_0, window_bounds = array<i64: 8, 32>}, {transform_indices = @transform_1, window_bounds = array<i64: 8, 1>}, {transform_indices = @transform_2, window_bounds = array<i64: 8, 16>}, {transform_indices = @transform_3, window_bounds = array<i64: 8, 16>}, {transform_indices = @transform_4, window_bounds = array<i64: 1, 1>}]} {
    %c0 = arith.constant 0 : index
    %c0_0 = arith.constant 0 : index
    %0 = vector.load %arg1[%c0, %c0_0] : memref<8x32xf32, #tpu.memory_space<vmem>>, vector<8x32xf32>
    %c0_1 = arith.constant 0 : index
    %c0_2 = arith.constant 0 : index
    %1 = vector.load %arg2[%c0_1, %c0_2] : memref<8x1xi32, #tpu.memory_space<vmem>>, vector<8x1xi32>
    %cst = arith.constant dense<0xFF800000> : vector<8xf32>
    %2 = vector.multi_reduction <maximumf>, %0, %cst [1] : vector<8x32xf32> to vector<8xf32>
    %3 = vector.shape_cast %2 : vector<8xf32> to vector<8x1xf32>
    %4 = vector.broadcast %3 : vector<8x1xf32> to vector<8x32xf32>
    %5 = arith.subf %0, %4 : vector<8x32xf32>
    %6 = math.exp %5 : vector<8x32xf32>
    %cst_3 = arith.constant dense<0.000000e+00> : vector<8xf32>
    %7 = vector.multi_reduction <add>, %6, %cst_3 [1] : vector<8x32xf32> to vector<8xf32>
    %8 = vector.shape_cast %7 : vector<8xf32> to vector<8x1xf32>
    %9 = math.log %8 : vector<8x1xf32>
    %10 = arith.addf %3, %9 : vector<8x1xf32>
    %11 = tpu.iota {dimensions = array<i32: 1>} : vector<8x32xi32>
    %12 = vector.broadcast %1 : vector<8x1xi32> to vector<8x32xi32>
    %13 = arith.cmpi eq, %11, %12 : vector<8x32xi32>
    %cst_4 = arith.constant 0.000000e+00 : f32
    %14 = vector.broadcast %cst_4 : f32 to vector<8x32xf32>
    %15 = arith.select %13, %0, %14 : vector<8x32xi1>, vector<8x32xf32>
    %cst_5 = arith.constant dense<0.000000e+00> : vector<8xf32>
    %16 = vector.multi_reduction <add>, %15, %cst_5 [1] : vector<8x32xf32> to vector<8xf32>
    %17 = vector.shape_cast %16 : vector<8xf32> to vector<8x1xf32>
    %18 = arith.subf %10, %17 : vector<8x1xf32>
    %cst_6 = arith.constant 0.000000e+00 : f32
    %19 = vector.broadcast %cst_6 : f32 to vector<8x1xf32>
    %20 = arith.subf %19, %18 : vector<8x1xf32>
    %21 = math.exp %20 : vector<8x1xf32>
    %cst_7 = arith.constant 1.000000e+00 : f32
    %22 = vector.broadcast %cst_7 : f32 to vector<8x1xf32>
    %23 = arith.subf %22, %21 : vector<8x1xf32>
    %24 = arith.mulf %23, %23 : vector<8x1xf32>
    %25 = arith.mulf %24, %18 : vector<8x1xf32>
    %26 = tpu.iota {dimensions = array<i32: 0>} : vector<8x1xi32>
    %c8_i32 = arith.constant 8 : i32
    %27 = arith.muli %arg0, %c8_i32 : i32
    %28 = vector.broadcast %27 : i32 to vector<8x1xi32>
    %29 = arith.addi %26, %28 : vector<8x1xi32>
    %c8_i32_8 = arith.constant 8 : i32
    %30 = vector.broadcast %c8_i32_8 : i32 to vector<8x1xi32>
    %31 = arith.cmpi slt, %29, %30 : vector<8x1xi32>
    %cst_9 = arith.constant 0.000000e+00 : f32
    %32 = vector.broadcast %cst_9 : f32 to vector<8x1xf32>
    %33 = arith.select %31, %25, %32 : vector<8x1xi1>, vector<8x1xf32>
    %34 = vector.shape_cast %33 : vector<8x1xf32> to vector<1x8x1xf32>
    %cst_10 = arith.constant dense<0.000000e+00> : vector<1xf32>
    %35 = vector.multi_reduction <add>, %34, %cst_10 [1, 2] : vector<1x8x1xf32> to vector<1xf32>
    %36 = vector.shape_cast %35 : vector<1xf32> to vector<1x1x1xf32>
    %37 = vector.extract %36[0, 0, 0] : f32 from vector<1x1x1xf32>
    %c0_11 = arith.constant 0 : index
    %c0_12 = arith.constant 0 : index
    %38 = vector.load %arg3[%c0_11, %c0_12] : memref<8x16xf32, #tpu.memory_space<vmem>>, vector<8x16xf32>
    %c0_13 = arith.constant 0 : index
    %c0_14 = arith.constant 0 : index
    %39 = vector.load %arg4[%c0_13, %c0_14] : memref<8x16xf32, #tpu.memory_space<vmem>>, vector<8x16xf32>
    %cst_15 = arith.constant 1.000000e+00 : f32
    %40 = vector.broadcast %cst_15 : f32 to vector<8x16xf32>
    %41 = arith.addf %40, %39 : vector<8x16xf32>
    %42 = arith.mulf %38, %38 : vector<8x16xf32>
    %43 = arith.subf %41, %42 : vector<8x16xf32>
    %44 = math.exp %39 : vector<8x16xf32>
    %45 = arith.subf %43, %44 : vector<8x16xf32>
    %cst_16 = arith.constant 0.000000e+00 : f32
    %46 = vector.broadcast %cst_16 : f32 to vector<8x16xf32>
    %47 = arith.subf %46, %45 : vector<8x16xf32>
    %cst_17 = arith.constant 5.000000e-01 : f32
    %48 = vector.broadcast %cst_17 : f32 to vector<8x16xf32>
    %49 = arith.mulf %47, %48 : vector<8x16xf32>
    %50 = vector.shape_cast %49 : vector<8x16xf32> to vector<1x8x16xf32>
    %cst_18 = arith.constant dense<0.000000e+00> : vector<1xf32>
    %51 = vector.multi_reduction <add>, %50, %cst_18 [1, 2] : vector<1x8x16xf32> to vector<1xf32>
    %52 = vector.shape_cast %51 : vector<1xf32> to vector<1x1x1xf32>
    %53 = vector.extract %52[0, 0, 0] : f32 from vector<1x1x1xf32>
    %cst_19 = arith.constant 0.00999999977 : f32
    %54 = arith.mulf %cst_19, %53 : f32
    %55 = arith.addf %37, %54 : f32
    %56 = vector.broadcast %55 : f32 to vector<1x1xf32>
    %c0_20 = arith.constant 0 : index
    %c0_21 = arith.constant 0 : index
    %57 = vector.load %arg5[%c0_20, %c0_21] : memref<1x1xf32, #tpu.memory_space<vmem>>, vector<1x1xf32>
    tpu.vector_store %arg5[%c0_20, %c0_21], %56 {strides = array<i32>} : memref<1x1xf32, #tpu.memory_space<vmem>>, vector<1x1xf32>,
    return
  }
  func.func @transform_0(%arg0: i32) -> (i32, i32) {
    %c0_i32 = arith.constant 0 : i32
    %c0_i32_0 = arith.constant 0 : i32
    return %arg0, %c0_i32 : i32, i32
  }
  func.func @transform_1(%arg0: i32) -> (i32, i32) {
    %c0_i32 = arith.constant 0 : i32
    %c0_i32_0 = arith.constant 0 : i32
    return %arg0, %c0_i32 : i32, i32
  }
  func.func @transform_2(%arg0: i32) -> (i32, i32) {
    %c0_i32 = arith.constant 0 : i32
    %c0_i32_0 = arith.constant 0 : i32
    return %arg0, %c0_i32 : i32, i32
  }
  func.func @transform_3(%arg0: i32) -> (i32, i32) {
    %c0_i32 = arith.constant 0 : i32
    %c0_i32_0 = arith.constant 0 : i32
    return %arg0, %c0_i32 : i32, i32
  }
  func.func @transform_4(%arg0: i32) -> (i32, i32) {
    %c0_i32 = arith.constant 0 : i32
    %c0_i32_0 = arith.constant 0 : i32
    return %arg0, %c0_i32 : i32, i32
  }
}

</mosaic_0001>

<bundles_post_ra>
// kernel: tpu_custom_call.1
= control target key start
LH: loop header
LB: loop body
LE: loop exit
PB: predicated region body
PF: predicated region fallthrough
CT: control target
= control target key end

     0   :  { %9 = vsyncpa [#allocation3], 0  ;;  %s249_s0 = inlined_call_operand.vmem [shape: f32[8,32], index: 0, kind: input, shape index: {}]   ;;  %s250_s1 = inlined_call_operand.vmem [shape: s32[8,1], index: 1, kind: input, shape index: {}]   ;;  %s251_s2 = inlined_call_operand.vmem [shape: f32[8,16], index: 2, kind: input, shape index: {}]   ;;  %s252_s3 = inlined_call_operand.hbm [shape: f32[8,16], index: 3, kind: input, shape index: {}]   ;;  %s253_s4 = inlined_call_operand.hbm [shape: f32[1,1], index: 4, kind: output, shape index: {}]  }
   0x1   :  { %10 = vsyncpa [#allocation4], 0  ;;  %s185_s15 = smov [#allocation2]   ;;  %s137_s19 = scalar_lea.hbm %s252_s3, 128 }
   0x2   :  { %s23_s16 = sshll.u32 %s185_s15, 4  ;;  %p138_p0 = scmp.ne.s32.totalorder %s252_s3, %s137_s19  ;;  %s24_s16 = int_to_ptr.vmem [resolvable:$true] %s23_s16 }
   0x3   :  { %p141_p1 = scmp.lt.u32.totalorder %s137_s19, %s252_s3 }
   0x5   :  { %p143_p2 = pnand %p141_p1, %p138_p0 }
   0x7   :  { %146 = shalt.err (!%p143_p2)
}
   0x8   :  { %s147_s24 = scalar_lea.vmem %s24_s16, 128  ;;  %p152_p4 = scmp.lt.s32.totalorder %s24_s16, %s24_s16 }
   0x9   :  { %p148_p3 = scmp.ne.s32.totalorder %s24_s16, %s147_s24  ;;  %p153_p5 = scmp.lt.s32.totalorder %s147_s24, %s147_s24 }
   0xb   :  { %p154_p6 = por %p153_p5, %p152_p4 }
   0xd   :  { %p155_p7 = pnand %p154_p6, %p148_p3 }
   0xf   :  { %158 = shalt.err (!%p155_p7)
}
  0x10   :  { %26 = dma.hbm_to_vmem [thread:$0]  %s252_s3, 128, %s24_s16, [#allocation3]  }
  0x11   :  { %181 = dma.done.wait [#allocation3], 128  }
  0x12   :  { %182 = vsyncadd [#allocation3], 4294967168  ;;  %v186_v0 = vmov 0   ;;  %vm32_vm0 = vcmask 261120   ;;  %v30_v1 = vld [vmem:[%s249_s0] sm:$0xff]  ;;  %v45_v7 = vlaneseq  ;;  %vm69_vm2 = vcmask 7168  }
  0x13   :  { %128 = vset.pattern.permute.xlu0 %v186_v0  ;;  %v33_v2 = vsel %vm32_vm0, %v30_v1, -inf  ;;  %v31_v3 = vld [vmem:[%s250_s1] sm:$0xff]  ;;  %vm90_vm3 = vcmask 130048   ;;  %s187_s6 = smov [#allocation5]   ;;  %vm104_vm4 = vcmask 0  }
  0x14   :  { %34 = vmax.xlane.f32.xlu0 %v33_v2  ;;  %v46_v8 = vand.u32 127, %v45_v7  ;;  %v81_v15 = vld [vmem:[#allocation2] sm:$0xff]  ;;  %s112_s7 = sshll.u32 %s187_s6, 4  ;;  %s113_s7 = int_to_ptr.vmem [resolvable:$true] %s112_s7 }
  0x15   :  { %v85_v18 = vmul.f32 1.442695, %v81_v15  ;;  %v80_v23 = vld [vmem:[%s251_s2] sm:$0xff]  ;;  %v82_v25 = vadd.f32 1.0, %v81_v15  ;;  %s159_s9 = scalar_lea.vmem %s113_s7, 16  ;;  %s163_s10 = scalar_lea.vmem %s113_s7, 32 }
  0x16   :  { %v83_v26 = vmul.f32 %v80_v23, %v80_v23  ;;  %p160_p8 = scmp.ne.s32.totalorder %s113_s7, %s159_s9  ;;  %p164_p9 = scmp.lt.s32.totalorder %s113_s7, %s113_s7 }
  0x17   :  { %p165_p10 = scmp.lt.s32.totalorder %s163_s10, %s159_s9 }
  0x18   :  { %v84_v27 = vsub.f32 %v82_v25, %v83_v26 }
  0x19   :  { %p166_p11 = por %p165_p10, %p164_p9 }
  0x1b   :  { %p167_p12 = pnand %p166_p11, %p160_p8 }
  0x2a   :  { %48 = vperm.xlu0 %128, %v31_v3  }
  0xa1   :  { %v35_v4 = vpop.xlane.xlu0 %34 }
  0xa2   :  { %v36_v5 = vsub.f32 %v30_v1, %v35_v4 }
  0xa4   :  { %v37_v6 = vmul.f32 1.442695, %v36_v5 }
  0xa6   :  { %129 = vpow2.f32 %v37_v6 }
  0xa9   :  { %v49_v9 = vpop.permute.xlu0 %48 }
  0xaa   :  { %vm50_vm1 = vcmp.eq.s32.totalorder %v46_v8, %v49_v9 }
  0xab   :  { %v51_v11 = vsel %vm50_vm1, %v30_v1, 0.0 }
  0xac   :  { %v52_v13 = vsel %vm32_vm0, %v51_v11, 0.0 }
  0xb0   :  { %v130_v10 = vpop.eup %129 }
  0xb1   :  { %v39_v12 = vsel %vm32_vm0, %v130_v10, 0.0 }
  0xb2   :  { %40 = vadd.xlane.f32.xlu1 %v39_v12 }
  0xb6   :  { %53 = vadd.xlane.f32.xlu1 %v52_v13 }
 0x13f   :  { %v41_v14 = vpop.xlane.xlu1 %40 }
 0x140   :  { %131 = vlog2.f32 %v41_v14 }
 0x141   :  { %133 = vpow2.f32 %v85_v18 }
 0x143   :  { %v54_v19 = vpop.xlane.xlu1 %53 }
 0x14a   :  { %v132_v16 = vpop.eup %131 }
 0x14b   :  { %v43_v17 = vmul.f32 0.6931472, %v132_v16  ;;  %v134_v28 = vpop.eup %133 }
 0x14c   :  { %v87_v29 = vsub.f32 %v84_v27, %v134_v28 }
 0x14d   :  { %v44_v20 = vadd.f32 %v43_v17, %v35_v4 }
 0x14e   :  { %v88_v32 = vsub.f32 0.0, %v87_v29 }
 0x14f   :  { %v55_v21 = vsub.f32 %v44_v20, %v54_v19 }
 0x150   :  { %v89_v35 = vmul.f32 0.5, %v88_v32 }
 0x151   :  { %v56_v22 = vsub.f32 0.0, %v55_v21 }
 0x152   :  { %v91_v37 = vsel %vm90_vm3, %v89_v35, 0.0 }
 0x153   :  { %v57_v24 = vmul.f32 1.442695, %v56_v22 }
 0x155   :  { %135 = vpow2.f32 %v57_v24 }
 0x15f   :  { %v136_v30 = vpop.eup %135 }
 0x160   :  { %v59_v31 = vsub.f32 1.0, %v136_v30 }
 0x162   :  { %v60_v33 = vmul.f32 %v59_v31, %v59_v31 }
 0x164   :  { %v61_v34 = vmul.f32 %v60_v33, %v55_v21 }
 0x166   :  { %v70_v36 = vsel %vm69_vm2, %v61_v34, 0.0 }
 0x167   :  { %71 = vadd.xlane.f32.xlu1 %v70_v36 }
 0x16b   :  { %92 = vadd.xlane.f32.xlu1 %v91_v37 }
 0x1f4   :  { %v72_v38 = vpop.xlane.xlu1 %71 }
 0x1f5   :  { %v73_v39 = vrot.slane %v72_v38, 4 }
 0x1f7   :  { %v74_v40 = vadd.f32 %v73_v39, %v72_v38 }
 0x1f8   :  { %v93_v41 = vpop.xlane.xlu1 %92 }
 0x1f9   :  { %v75_v42 = vrot.slane %v74_v40, 2  ;;  %v94_v43 = vrot.slane %v93_v41, 4 }
 0x1fb   :  { %v95_v44 = vadd.f32 %v94_v43, %v93_v41  ;;  %v76_v45 = vadd.f32 %v75_v42, %v74_v40 }
 0x1fd   :  { %v96_v46 = vrot.slane %v95_v44, 2  ;;  %v77_v47 = vrot.slane %v76_v45, 1 }
 0x1ff   :  { %v97_v48 = vadd.f32 %v96_v46, %v95_v44  ;;  %v78_v49 = vadd.f32 %v77_v47, %v76_v45 }
 0x201   :  { %121 = vpush %v78_v49  ;;  %v98_v50 = vrot.slane %v97_v48, 1 }
 0x203   :  { %v99_v51 = vadd.f32 %v98_v50, %v97_v48 }
 0x205   :  { %123 = vpush %v99_v51 }
 0x232   :  { %s122_s2 = spop %121 }
 0x236   :  { %s124_s3 = spop %123 }
 0x237   :  { %s101_s5 = smul.f32 0.01, %s124_s3 }
 0x239   :  { %s102_s8 = sadd.f32 %s122_s2, %s101_s5 }
 0x23b   :  { %v103_v52 = vstv %s102_s8 }
 0x23c   :  { %105 = vst.msk [vmem:[#allocation5] sm:$0x1] %vm104_vm4, %v103_v52 }
 0x23d   :  { %170 = shalt.err (!%p167_p12)
}
 0x23e   :  { %s171_s13 = scalar_lea.hbm %s253_s4, 16 }
 0x23f   :  { %p172_p13 = scmp.ne.s32.totalorder %s253_s4, %s171_s13  ;;  %p175_p0 = scmp.lt.u32.totalorder %s171_s13, %s253_s4 }
 0x241   :  { %p177_p1 = pnand %p175_p0, %p172_p13 }
 0x243   :  { %180 = shalt.err (!%p177_p1)
}
 0x244   :  { %115 = dma.vmem_to_hbm [thread:$0]  %s113_s7, 16, %s253_s4, [#allocation4]  }
 0x245   :  { %183 = dma.done.wait [#allocation4], 16  }
 0x246   :  { %184 = vsyncadd [#allocation4], 4294967280 }
 0x247   :  { %119 = vsyncpa [#allocation3], 1 }
 0x248   :  { %120 = vsyncpa [#allocation4], 1 }

</bundles_post_ra>
